<compile_context>
chip_gen: v7x
topology: tpu7x:2x2x1
jax: 0.10.0
libtpu: 0.0.40
codegen_flags: <defaults>
</compile_context>

<pallas_src>
import functools

import jax
import jax.numpy as jnp
from jax.experimental import pallas as pl
from jax.experimental.pallas import tpu as pltpu


def _round_up(x, m):
    return ((x + m - 1) // m) * m


def _cdiv(a, b):
    return -(-a // b)


# ----------------------------- kernels --------------------------------------


def _fc2_kernel_single_k(x_ref, w_ref, b_ref, o_ref):
    """Whole-K reduction in one MXU call: no acc scratch, no init/finalize."""
    o_ref[...] = (
        jnp.dot(x_ref[...], w_ref[...], preferred_element_type=jnp.float32)
        + b_ref[...]
    ).astype(o_ref.dtype)


def _fc2_kernel_acc(x_ref, w_ref, b_ref, o_ref, acc_ref):
    """One (tm, tn) output tile, accumulated over the K grid axis (axis 2)."""
    k = pl.program_id(2)

    @pl.when(k == 0)
    def _():
        acc_ref[...] = jnp.zeros_like(acc_ref)

    acc_ref[...] += jnp.dot(
        x_ref[...], w_ref[...], preferred_element_type=jnp.float32
    )

    @pl.when(k == pl.num_programs(2) - 1)
    def _():
        o_ref[...] = (acc_ref[...] + b_ref[...]).astype(o_ref.dtype)


# ----------------------------- wrapper ---------------------------------------

_VMEM_LIMIT = 32 * 1024 * 1024  # raises v5e's 16 MiB default; <= physical on all gens


@functools.partial(jax.jit, static_argnames=("n", "tm", "tn", "tk"))
def _fc2_forward(x2d, w_t, bias_row, *, n, tm, tn, tk):
    """y = x2d @ w_t + bias_row with pre-padded w_t:(Kp,Np) bf16, bias_row:(1,Np) f32."""
    m, k = x2d.shape
    kp, np_ = w_t.shape
    mp = _round_up(m, tm)

    # TODO(synk): move this cast into the kernel once f16 refs are verified.
    xb = x2d.astype(jnp.bfloat16)
    if (mp - m) or (kp - k):
        xb = jnp.pad(xb, ((0, mp - m), (0, kp - k)))

    gm, gn, gk = mp // tm, np_ // tn, kp // tk
    if gk == 1:
        out = pl.pallas_call(
            _fc2_kernel_single_k,
            out_shape=jax.ShapeDtypeStruct((mp, np_), jnp.bfloat16),
            grid_spec=pltpu.PrefetchScalarGridSpec(
                num_scalar_prefetch=0,
                grid=(gm, gn),
                in_specs=[
                    pl.BlockSpec((tm, kp), lambda i, j: (i, 0)),   # x (whole K)
                    pl.BlockSpec((kp, tn), lambda i, j: (0, j)),   # W^T column slab
                    pl.BlockSpec((1, tn), lambda i, j: (0, j)),    # bias (f32)
                ],
                out_specs=pl.BlockSpec((tm, tn), lambda i, j: (i, j)),
            ),
            compiler_params=pltpu.CompilerParams(
                dimension_semantics=("parallel", "parallel"),
                vmem_limit_bytes=_VMEM_LIMIT,
            ),
        )(xb, w_t, bias_row)
    else:
        out = pl.pallas_call(
            _fc2_kernel_acc,
            out_shape=jax.ShapeDtypeStruct((mp, np_), jnp.bfloat16),
            grid_spec=pltpu.PrefetchScalarGridSpec(
                num_scalar_prefetch=0,
                grid=(gm, gn, gk),
                in_specs=[
                    pl.BlockSpec((tm, tk), lambda i, j, kk: (i, kk)),  # x tile
                    pl.BlockSpec((tk, tn), lambda i, j, kk: (kk, j)),  # W^T tile
                    pl.BlockSpec((1, tn), lambda i, j, kk: (0, j)),    # bias (f32)
                ],
                out_specs=pl.BlockSpec((tm, tn), lambda i, j, kk: (i, j)),
                scratch_shapes=[pltpu.VMEM((tm, tn), jnp.float32)],
            ),
            compiler_params=pltpu.CompilerParams(
                dimension_semantics=("parallel", "parallel", "arbitrary"),
                vmem_limit_bytes=_VMEM_LIMIT,
            ),
        )(xb, w_t, bias_row)

    # Fused un-pad slice + cast back to float16 (matching torch f16 output).
    return out[:m, :n].astype(jnp.float16)


class ReduceLayerFC2:
    """JAX/Pallas port of ReduceLayer_fc2."""

    _TM_BUCKETS = (16, 32, 64, 128, 256, 512)   # static buckets -> few recompiles
    _TK_MAX = 2048
    _TN_MAX_BLOCKS = 4                           # tn <= 512

    def __init__(self, weight, bias, sparsity, indices_list):
        weight = jnp.asarray(weight)
        bias = jnp.asarray(bias)
        indices = jnp.asarray(indices_list)

        self.out_features = int(weight.shape[0])
        self.in_features = int(weight.shape[1])
        self.remained_neurons = int(indices.shape[0])

        # Mirrors adjust_neurons(): params rounded to f16, column gather.
        # Only the pre-transposed/padded bf16 (K, N) slabs are retained.
        w16 = weight.astype(jnp.float16)
        b16 = bias.astype(jnp.float16)
        w16_filt = w16[:, indices]

        self._tn, self._np = self._pick_n_tiles(self.out_features)
        self._dense = self._prep(w16)
        self._reduced = self._prep(w16_filt)

        bias_row = b16.astype(jnp.float32).reshape(1, self.out_features)
        self._bias_row = jnp.pad(
            bias_row, ((0, 0), (0, self._np - self.out_features))
        )

    def _pick_n_tiles(self, n):
        """tn up to 512 while keeping >=2 N blocks when possible (v7x 2 TCs)."""
        nblocks = _round_up(n, 128) // 128
        tn_blocks = 1
        for cand in range(self._TN_MAX_BLOCKS, 1, -1):   # 4, 3, 2
            if nblocks % cand == 0 and nblocks // cand >= 2:
                tn_blocks = cand
                break
        return tn_blocks * 128, nblocks * 128

    def _prep(self, w16):
        """Transpose/cast/pad a (N, K) f16 weight into a bf16 (Kp, Np) slab."""
        n, k = w16.shape
        kp = _round_up(k, 128)
        if kp <= self._TK_MAX:
            gk, tk = 1, kp                       # single-K fast path
        else:
            gk = _cdiv(kp, self._TK_MAX)         # balanced 128-aligned chunks
            tk = _round_up(_cdiv(kp, gk), 128)
        kp_pad = tk * gk
        w_t = jnp.transpose(w16).astype(jnp.bfloat16)      # (K, N)
        w_t = jnp.pad(w_t, ((0, kp_pad - k), (0, self._np - n)))
        return {"w_t": w_t, "tk": tk, "k": k}

    def __call__(self, x):
        # Path selection on the (static) leading batch dim, as in torch.
        path = self._dense if x.shape[0] > 1 else self._reduced

        k = x.shape[-1]
        if k != path["k"]:
            raise ValueError(
                f"x last dim {k} does not match expected in_features "
                f"{path['k']} for this path (batch={x.shape[0]})."
            )

        lead = x.shape[:-1]
        m = 1
        for d in lead:
            m *= d
        tm = next((b for b in self._TM_BUCKETS if b >= m), self._TM_BUCKETS[-1])

        x2d = x.reshape(m, k)
        out2d = _fc2_forward(
            x2d, path["w_t"], self._bias_row,
            n=self.out_features, tm=tm, tn=self._tn, tk=path["tk"],
        )
        return out2d.reshape(*lead, self.out_features)


if __name__ == "__main__":
    key = jax.random.PRNGKey(0)
    k_w, k_b, k_x1, k_x2, k_idx = jax.random.split(key, 5)

    # OPT fc2: in_features = ffn_dim, out_features = hidden_size (kept small,
    # but in_features > 2048 so the multi-K accumulator kernel is exercised).
    in_features = 2304
    out_features = 384
    sparsity = 0.3
    remained = int(in_features * sparsity)          # 691 (not a multiple of 128)

    weight = jax.random.normal(k_w, (out_features, in_features), jnp.float32) * 0.02
    bias = jax.random.normal(k_b, (out_features,), jnp.float32) * 0.02
    # Deterministic stand-in for the module's global `indices_list`.
    indices_list = jnp.sort(jax.random.permutation(k_idx, in_features)[:remained])

    # f16 reference params (what the torch module stores after adjust_neurons).
    w16 = weight.astype(jnp.float16)
    b16 = bias.astype(jnp.float16)
    w16_filt = w16[:, indices_list]

    layer = ReduceLayerFC2(weight, bias, sparsity, indices_list)

    # --- dense path: batch > 1 -> x @ weight.T + bias (multi-K accumulator) ---
    x_dense = jax.random.normal(k_x1, (2, 7, in_features), jnp.float16)    # M=14
    y_dense = layer(x_dense)
    jax.block_until_ready(y_dense)
    ref_dense = (
        x_dense.astype(jnp.float32) @ w16.astype(jnp.float32).T
        + b16.astype(jnp.float32)
    )
    assert y_dense.shape == (2, 7, out_features)
    assert y_dense.dtype == jnp.float16
    assert jnp.allclose(y_dense.astype(jnp.float32), ref_dense, atol=2e-2, rtol=2e-2)

    # --- reduced path: batch == 1 -> x @ filtered_W.T + bias (single-K kernel) ---
    x_sparse = jax.random.normal(k_x2, (1, 8, remained), jnp.float16)      # M=8
    y_sparse = layer(x_sparse)
    jax.block_until_ready(y_sparse)
    ref_sparse = (
        x_sparse.astype(jnp.float32) @ w16_filt.astype(jnp.float32).T
        + b16.astype(jnp.float32)
    )
    assert y_sparse.shape == (1, 8, out_features)
    assert y_sparse.dtype == jnp.float16
    assert jnp.allclose(y_sparse.astype(jnp.float32), ref_sparse, atol=2e-2, rtol=2e-2)

    print("KERNEL_OK")
</pallas_src>

<mosaic_0001>
module attributes {stable_mosaic.version = 11 : i64} {
  func.func @_fc2_kernel_acc(%arg0: i32, %arg1: i32, %arg2: i32, %arg3: memref<16x1152xbf16, #tpu.memory_space<vmem>>, %arg4: memref<1152x128xbf16, #tpu.memory_space<vmem>>, %arg5: memref<1x128xf32, #tpu.memory_space<vmem>>, %arg6: memref<16x128xbf16, #tpu.memory_space<vmem>>, %arg7: memref<16x128xf32, #tpu.memory_space<vmem>>) attributes {dimension_semantics = [#tpu.dimension_semantics<parallel>, #tpu.dimension_semantics<parallel>, #tpu.dimension_semantics<arbitrary>], iteration_bounds = array<i64: 1, 3, 2>, scalar_prefetch = 0 : i64, scratch_operands = 1 : i64, tpu.core_type = #tpu.core_type<tc>, window_params = [{transform_indices = @transform_0, window_bounds = array<i64: 16, 1152>}, {transform_indices = @transform_1, window_bounds = array<i64: 1152, 128>}, {transform_indices = @transform_2, window_bounds = array<i64: 1, 128>}, {transform_indices = @transform_3, window_bounds = array<i64: 16, 128>}]} {
    %c0_i32 = arith.constant 0 : i32
    %0 = arith.cmpi eq, %arg2, %c0_i32 : i32
    %1 = arith.extui %0 : i1 to i32
    %c0_i32_0 = arith.constant 0 : i32
    %2 = arith.cmpi ne, %1, %c0_i32_0 : i32
    scf.if %2 {
      %cst_9 = arith.constant 0.000000e+00 : f32
      %12 = vector.broadcast %cst_9 : f32 to vector<16x128xf32>
      %c0_10 = arith.constant 0 : index
      %c0_11 = arith.constant 0 : index
      %13 = vector.load %arg7[%c0_10, %c0_11] : memref<16x128xf32, #tpu.memory_space<vmem>>, vector<16x128xf32>
      tpu.vector_store %arg7[%c0_10, %c0_11], %12 {strides = array<i32>} : memref<16x128xf32, #tpu.memory_space<vmem>>, vector<16x128xf32>,
    } else {
    }
    %c0 = arith.constant 0 : index
    %c0_1 = arith.constant 0 : index
    %3 = vector.load %arg7[%c0, %c0_1] : memref<16x128xf32, #tpu.memory_space<vmem>>, vector<16x128xf32>
    %c0_2 = arith.constant 0 : index
    %c0_3 = arith.constant 0 : index
    %4 = vector.load %arg3[%c0_2, %c0_3] : memref<16x1152xbf16, #tpu.memory_space<vmem>>, vector<16x1152xbf16>
    %c0_4 = arith.constant 0 : index
    %c0_5 = arith.constant 0 : index
    %5 = vector.load %arg4[%c0_4, %c0_5] : memref<1152x128xbf16, #tpu.memory_space<vmem>>, vector<1152x128xbf16>
    %cst = arith.constant dense<0.000000e+00> : vector<16x128xf32>
    %6 = tpu.matmul %4, %5, %cst {dimension_numbers = #tpu.dot_dimension_numbers<[1], [0], [0], [1], [0, 0, 1, 1], [], []>} : vector<16x1152xbf16>, vector<1152x128xbf16>, vector<16x128xf32> -> vector<16x128xf32>
    %7 = arith.addf %3, %6 : vector<16x128xf32>
    %c0_6 = arith.constant 0 : index
    %c0_7 = arith.constant 0 : index
    %8 = vector.load %arg7[%c0_6, %c0_7] : memref<16x128xf32, #tpu.memory_space<vmem>>, vector<16x128xf32>
    tpu.vector_store %arg7[%c0_6, %c0_7], %7 {strides = array<i32>} : memref<16x128xf32, #tpu.memory_space<vmem>>, vector<16x128xf32>,
    %c1_i32 = arith.constant 1 : i32
    %9 = arith.cmpi eq, %arg2, %c1_i32 : i32
    %10 = arith.extui %9 : i1 to i32
    %c0_i32_8 = arith.constant 0 : i32
    %11 = arith.cmpi ne, %10, %c0_i32_8 : i32
    scf.if %11 {
      %c0_9 = arith.constant 0 : index
      %c0_10 = arith.constant 0 : index
      %12 = vector.load %arg7[%c0_9, %c0_10] : memref<16x128xf32, #tpu.memory_space<vmem>>, vector<16x128xf32>
      %c0_11 = arith.constant 0 : index
      %c0_12 = arith.constant 0 : index
      %13 = vector.load %arg5[%c0_11, %c0_12] : memref<1x128xf32, #tpu.memory_space<vmem>>, vector<1x128xf32>
      %14 = vector.broadcast %13 : vector<1x128xf32> to vector<16x128xf32>
      %15 = arith.addf %12, %14 : vector<16x128xf32>
      %16 = arith.truncf %15 : vector<16x128xf32> to vector<16x128xbf16>
      %c0_13 = arith.constant 0 : index
      %c0_14 = arith.constant 0 : index
      %17 = vector.load %arg6[%c0_13, %c0_14] : memref<16x128xbf16, #tpu.memory_space<vmem>>, vector<16x128xbf16>
      tpu.vector_store %arg6[%c0_13, %c0_14], %16 {strides = array<i32>} : memref<16x128xbf16, #tpu.memory_space<vmem>>, vector<16x128xbf16>,
    } else {
    }
    return
  }
  func.func @transform_0(%arg0: i32, %arg1: i32, %arg2: i32) -> (i32, i32) {
    %c0_i32 = arith.constant 0 : i32
    return %arg0, %arg2 : i32, i32
  }
  func.func @transform_1(%arg0: i32, %arg1: i32, %arg2: i32) -> (i32, i32) {
    %c0_i32 = arith.constant 0 : i32
    return %arg2, %arg1 : i32, i32
  }
  func.func @transform_2(%arg0: i32, %arg1: i32, %arg2: i32) -> (i32, i32) {
    %c0_i32 = arith.constant 0 : i32
    %c0_i32_0 = arith.constant 0 : i32
    return %c0_i32, %arg1 : i32, i32
  }
  func.func @transform_3(%arg0: i32, %arg1: i32, %arg2: i32) -> (i32, i32) {
    %c0_i32 = arith.constant 0 : i32
    return %arg0, %arg1 : i32, i32
  }
}

</mosaic_0001>

<bundles_post_ra>
// kernel: _fc2_forward.1
= control target key start
LH: loop header
LB: loop body
LE: loop exit
PB: predicated region body
PF: predicated region fallthrough
CT: control target
= control target key end

     0   :  { %s2367_s0 = inlined_call_operand.vmem [shape: bf16[16,2304], index: 0, kind: input, shape index: {}]   ;;  %s2368_s1 = inlined_call_operand.hbm [shape: bf16[2304,384], index: 1, kind: input, shape index: {}]   ;;  %s2369_s2 = inlined_call_operand.hbm [shape: f32[1,384], index: 2, kind: input, shape index: {}]   ;;  %s2370_s3 = inlined_call_operand.vmem [shape: bf16[16,384], index: 3, kind: output, shape index: {}]  }
   0x1   :  { %2378 = sst [smem:[#allocation18_spill]] %s2367_s0 }
   0x2   :  { %2379 = sst [smem:[#allocation19_spill]] %s2368_s1 }
   0x3   :  { %8 = vsyncpa [#allocation5], 0 }
   0x4   :  { %10 = vsyncpa [#allocation5 + $0x1], 0 }
   0x5   :  { %11 = vsyncpa [#allocation7], 0 }
   0x6   :  { %13 = vsyncpa [#allocation7 + $0x1], 0  ;;  %s2004_s12 = smov 0   ;;  %s2006_s13 = smov 0  }
   0x7   :  { %s2008_s14 = smov 0   ;;  %s2010_s15 = smov 0  }
   0x8   :  { %s2012_s16 = smov 0   ;;  %s2014_s17 = smov 0  }
   0x9   :  { %s2016_s18 = smov 0   ;;  %s2018_s19 = smov 0  }
   0xa   :  { %s2020_s20 = smov 0   ;;  %s2022_s21 = smov 0  }
   0xb   :  { %s2024_s22 = smov 0   ;;  %s2026_s23 = smov 0  }
   0xc   :  { %s2028_s24 = smov 0  }
   0xd LB: > { %2380 = sst [smem:[#allocation11_spill]] %s1946_s17  ;;  %s1375_s25 = sadd.s32 4294967295, %s1974_s24   ;;  %s1974_s24 = sphi %s2028_s24, %s19_s24   ;;  %s1970_s23 = sphi %s2026_s23, %s2412_s23   ;;  %s1966_s22 = sphi %s2024_s22, %s2404_s22   ;;  %s1962_s21 = sphi %s2022_s21, %s2411_s21   ;;  %s1958_s20 = sphi %s2020_s20, %s2403_s20   ;;  %s1954_s19 = sphi %s2018_s19, %s2402_s19   ;;  %s1950_s18 = sphi %s2016_s18, %s2401_s18   ;;  %s1946_s17 = sphi %s2014_s17, %s2400_s17   ;;  %s1942_s16 = sphi %s2012_s16, %s2410_s16   ;;  %s1938_s15 = sphi %s2010_s15, %s2409_s15   ;;  %s1934_s14 = sphi %s2008_s14, %s2408_s14   ;;  %s1930_s13 = sphi %s2006_s13, %s2407_s13   ;;  %s1926_s12 = sphi %s2004_s12, %s2406_s12  }
   0xe   : > { %2381 = sst [smem:[#allocation12_spill]] %s1954_s19  ;;  %s31_s26 = sadd.s32 1, %s1966_s22 }
   0xf   : > { %2382 = sst [smem:[#allocation13_spill]] %s1966_s22  ;;  %p32_p0 = scmp.ge.s32.totalorder %s31_s26, 2 }
  0x10   : > { %s34_s27 = sadd.s32 1, %s1970_s23  ;;  %s47_s28 = sadd.s32 1, %s1954_s19 }
  0x11   : > { %p54_p1 = scmp.ne.s32.totalorder %s1954_s19, %s1950_s18  ;;  %s2414_s26 = smov (%p32_p0, %s31_s26), 0 }
  0x12   : > { %2383 = sst [smem:[#allocation14_spill]] %s2414_s26  ;;  %s2416_s27 = smov (!%p32_p0, %s34_s27), %s1970_s23 }
  0x13   : > { %s43_s29 = ssub.s32 %s1966_s22, %s2414_s26  ;;  %p55_p2 = scmp.eq.s32.totalorder %s1974_s24, 0 }
  0x14   : > { %p36_p3 = scmp.ge.s32.totalorder %s2416_s27, 3  ;;  %p45_p4 = scmp.eq.s32.totalorder %s43_s29, 0 }
  0x15   : > { %p2083_p5 = por %p55_p2, %p54_p1  ;;  %s75_s4 = sadd.s32 1, %s1946_s17 }
  0x16   : > { %s2418_s27 = smov (%p36_p3, %s2416_s27), 0  ;;  %p82_p6 = scmp.ne.s32.totalorder %s1946_s17, %s1942_s16 }
  0x17   : > { %2385 = sst [smem:[#allocation15_spill]] %s2418_s27  ;;  %s71_s6 = ssub.s32 %s1970_s23, %s2418_s27 }
  0x18   : > { %s2091_s5 = scalar_select %p45_p4, %s1954_s19, %s47_s28  }
  0x19   : > { %s72_s7 = sor.u32 %s71_s6, %s43_s29  ;;  %p88_p7 = scmp.ne.s32.totalorder %s1942_s16, %s1938_s15 }
  0x1a   : > { %2386 = sst [smem:[#allocation16_spill]] %s2091_s5  ;;  %p73_p8 = scmp.eq.s32.totalorder %s72_s7, 0 }
  0x1b   : > { %p2101_p9 = por %p82_p6, %p55_p2  ;;  %p89_p10 = scmp.eq.s32.totalorder %s1375_s25, 0 }
  0x1c   : > { %p99_p11 = scmp.eq.s32.totalorder %s71_s6, 0  ;;  %s101_s11 = sadd.s32 1, %s1934_s14 }
  0x1d   : > { %s2108_s9 = scalar_select %p73_p8, %s1946_s17, %s75_s4  }
  0x1e   : > { %p2110_p12 = por %p89_p10, %p88_p7  ;;  %p108_p13 = scmp.ne.s32.totalorder %s1934_s14, %s1930_s13 }
  0x1f   : > { %2388 = sst [smem:[#allocation17_spill]] %s2108_s9  ;;  %p114_p0 = scmp.ne.s32.totalorder %s1930_s13, %s1926_s12 }
  0x20   : > { %s2389_s10 = scalar_select %p2110_p12, 1, 0 }
  0x21   : > { %s2116_s28 = scalar_select %p99_p11, %s1934_s14, %s101_s11  }
  0x22   : > { %p140_p1 = scmp.eq.s32.totalorder %s1375_s25, 5  ;;  %p2126_p3 = por %p108_p13, %p55_p2 }
  0x23   : > { %p2130_p4 = por %p114_p0, %p89_p10  ;;  %p1378_p7 = scmp.ge.s32.totalorder %s1974_s24, 6 }
  0x24   : > { %p2134_p6 = por %p140_p1, %p108_p13 }
  0x25   : > { %s2391_s29 = scalar_select %p2130_p4, 1, 0 }
  0x26   : > { %s2392_s4 = scalar_select %p2134_p6, 1, 0 }
  0x27   : > { %162 = sbr.rel (%p1378_p7) target bundleno = 115 (0x73), region = 16 }
  0x2e   : > { %165 = sbr.rel (!%p2083_p5) target bundleno = 60 (0x3c), region = 20  ;;  %s167_s12 = sand.u32 (%p2083_p5), 1, %s1954_s19  }
  0x2f   : > { %s1478_s25 = smul.u32 (%p2083_p5), 36, %s1966_s22  ;;  %s2393_s0 = sld [smem:[#allocation18_spill]] (%p2083_p5) }
  0x30   : > { %s1603_s6 = smul.u32 (%p2083_p5), 72, %s167_s12 }
  0x32   : > { %s169_s26 = scalar_lea.vmem (%p2083_p5), [#allocation3], %s1603_s6 }
  0x35   : > { %s175_s27 = scalar_lea.vmem %s2393_s0, %s1478_s25 }
  0x36   : > { %v190_v0 = vld [vmem:[%s175_s27] sm:$0xff]  ;;  %v192_v1 = vld [vmem:[%s175_s27 + $0x8] sm:$0xff]  ;;  %v194_v2 = vld [vmem:[%s175_s27 + $0x10] sm:$0xff] }
  0x37   : > { %191 = vst [vmem:[%s169_s26] sm:$0xff] %v190_v0  ;;  %193 = vst [vmem:[%s169_s26 + $0x8] sm:$0xff] %v192_v1  ;;  %v196_v3 = vld [vmem:[%s175_s27 + $0x18] sm:$0xff]  ;;  %v198_v4 = vld [vmem:[%s175_s27 + $0x48] sm:$0xff] }
  0x38   : > { %195 = vst [vmem:[%s169_s26 + $0x10] sm:$0xff] %v194_v2  ;;  %v200_v5 = vld [vmem:[%s175_s27 + $0x50] sm:$0xff]  ;;  %197 = vst [vmem:[%s169_s26 + $0x18] sm:$0xff] %v196_v3  ;;  %v202_v6 = vld [vmem:[%s175_s27 + $0x58] sm:$0xff] }
  0x39   : > { %199 = vst [vmem:[%s169_s26 + $0x24] sm:$0xff] %v198_v4  ;;  %201 = vst [vmem:[%s169_s26 + $0x2c] sm:$0xff] %v200_v5  ;;  %v204_v7 = vld [vmem:[%s175_s27 + $0x60] sm:$0xff]  ;;  %v1382_v9 = vld [vmem:[%s175_s27 + $0x68] sm:$0xf] }
  0x3a   : > { %v1380_v8 = vld [vmem:[%s175_s27 + $0x20] sm:$0xf]  ;;  %203 = vst [vmem:[%s169_s26 + $0x34] sm:$0xff] %v202_v6  ;;  %205 = vst [vmem:[%s169_s26 + $0x3c] sm:$0xff] %v204_v7 }
  0x3b   : > { %1381 = vst [vmem:[%s169_s26 + $0x20] sm:$0xf] %v1380_v8  ;;  %1383 = vst [vmem:[%s169_s26 + $0x44] sm:$0xf] %v1382_v9 }
  0x3c PF: > { %s223_s30 = sand.u32 1, %s1946_s17   ;;  %s1612_s25 = smul.u32 432, %s1966_s22 }
  0x3d   : > { %s1604_s12 = smul.u32 576, %s223_s30  ;;  %s2394_s1 = sld [smem:[#allocation19_spill]] }
  0x3e   : > { %s233_s6 = sadd.s32 %s1970_s23, %s1612_s25  ;;  %s2156_s26 = scalar_lea.sflag [#allocation5], %s223_s30 }
  0x3f   : > { %s227_s7 = scalar_lea.vmem [#allocation4], %s1604_s12  ;;  %s1384_s0 = sshll.u32 %s233_s6, 6 }
  0x40   : > { %s236_s11 = sshll.u32 %s227_s7, 4  ;;  %s2149_s11 = int_to_ptr.vmem [resolvable:$true] %s236_s11 }
  0x43   : > { %s2154_s9 = scalar_lea.hbm %s2394_s1, %s1384_s0  ;;  %s1812_s6 = scalar_lea.hbm %s2394_s1, 55296 }
  0x44   : > { %s1808_s27 = scalar_lea.hbm %s2154_s9, 9216  ;;  %p1813_p10 = scmp.lt.u32.totalorder %s2154_s9, %s2394_s1 }
  0x45   : > { %p1809_p2 = scmp.ne.s32.totalorder %s2154_s9, %s1808_s27  ;;  %p1814_p11 = scmp.lt.u32.totalorder %s1812_s6, %s1808_s27 }
  0x46   : > { %p1816_p0 = scmp.lt.u32.totalorder %s1808_s27, %s2154_s9 }
  0x47   : > { %p1810_p5 = pnand %p1809_p2, %p2101_p9  ;;  %p1815_p13 = por %p1814_p11, %p1813_p10 }
  0x49   : > { %p1811_p8 = pneg %p1810_p5  ;;  %p1817_p1 = por %p1816_p0, %p1815_p13 }
  0x4b   : > { %p1818_p7 = pnand %p1817_p1, %p1811_p8 }
  0x4d   : > { %1821 = shalt.err (!%p1818_p7)
}
  0x4e   : > { %s1822_s0 = scalar_lea.vmem %s2149_s11, 9216  ;;  %s1976_s19 = smov [#allocation4]  }
  0x4f   : > { %p1823_p2 = scmp.ne.s32.totalorder %s2149_s11, %s1822_s0  ;;  %s1826_s5 = sshll.u32 %s1976_s19, 4  ;;  %s1827_s5 = int_to_ptr.vmem [resolvable:$false] %s1826_s5 }
  0x50   : > { %s1828_s22 = scalar_lea.vmem %s1827_s5, 18432  ;;  %p1829_p4 = scmp.lt.s32.totalorder %s2149_s11, %s1827_s5 }
  0x51   : > { %p1824_p5 = pnand %p1823_p2, %p2101_p9  ;;  %p1830_p12 = scmp.lt.s32.totalorder %s1828_s22, %s1822_s0 }
  0x53   : > { %p1825_p6 = pneg %p1824_p5  ;;  %p1831_p10 = por %p1830_p12, %p1829_p4 }
  0x55   : > { %p1832_p11 = pnand %p1831_p10, %p1825_p6 }
  0x57   : > { %1835 = shalt.err (!%p1832_p11)
}
  0x58   : > { %s1977_s30 = smov 192   ;;  %s1978_s27 = smov 64  }
  0x59   : > { %s1979_s12 = smov 4   ;;  %s246_s25 = sand.u32 1, %s1934_s14  }
  0x5a   : > { %1608 = dma.hbm_to_vmem [thread:$0]  (%p2101_p9), %s2154_s9, 9216, %s2149_s11, %s2156_s26, %s1977_s30, %s1978_s27, %s1979_s12  }
  0x5b   : > { %s1385_s6 = sshll.u32 %s1970_s23, 4  ;;  %s249_s5 = scalar_lea.vmem [#allocation6], %s246_s25 }
  0x5c   : > { %s2185_s0 = scalar_lea.hbm %s2369_s2, %s1385_s6  ;;  %s256_s22 = sshll.u32 %s249_s5, 4  ;;  %s257_s22 = int_to_ptr.vmem [resolvable:$true] %s256_s22 }
  0x5d   : > { %s247_s1 = scalar_lea.sflag [#allocation7], %s246_s25  ;;  %s1836_s17 = scalar_lea.hbm %s2185_s0, 16 }
  0x5e   : > { %p1837_p12 = scmp.ne.s32.totalorder %s2185_s0, %s1836_s17  ;;  %s1840_s11 = scalar_lea.hbm %s2369_s2, 48 }
  0x5f   : > { %p1841_p6 = scmp.lt.u32.totalorder %s2185_s0, %s2369_s2  ;;  %p1842_p8 = scmp.lt.u32.totalorder %s1840_s11, %s1836_s17 }
  0x60   : > { %p1838_p4 = pnand %p1837_p12, %p2126_p3  ;;  %p1844_p0 = scmp.lt.u32.totalorder %s1836_s17, %s2185_s0 }
  0x61   : > { %p1843_p13 = por %p1842_p8, %p1841_p6 }
  0x62   : > { %p1839_p9 = pneg %p1838_p4 }
  0x63   : > { %p1845_p1 = por %p1844_p0, %p1843_p13 }
  0x65   : > { %p1846_p7 = pnand %p1845_p1, %p1839_p9 }
  0x67   : > { %1849 = shalt.err (!%p1846_p7)
}
  0x68   : > { %s1850_s27 = scalar_lea.vmem %s257_s22, 16  ;;  %s1980_s12 = smov [#allocation6]  }
  0x69   : > { %p1851_p2 = scmp.ne.s32.totalorder %s257_s22, %s1850_s27  ;;  %s1854_s25 = sshll.u32 %s1980_s12, 4  ;;  %s1855_s25 = int_to_ptr.vmem [resolvable:$false] %s1854_s25 }
  0x6a   : > { %s1856_s6 = scalar_lea.vmem %s1855_s25, 32  ;;  %p1857_p11 = scmp.lt.s32.totalorder %s257_s22, %s1855_s25 }
  0x6b   : > { %p1852_p5 = pnand %p1851_p2, %p2126_p3  ;;  %p1858_p12 = scmp.lt.s32.totalorder %s1856_s6, %s1850_s27 }
  0x6d   : > { %p1853_p10 = pneg %p1852_p5  ;;  %p1859_p4 = por %p1858_p12, %p1857_p11 }
  0x6f   : > { %p1860_p6 = pnand %p1859_p4, %p1853_p10 }
  0x71   : > { %1863 = shalt.err (!%p1860_p6)
}
  0x72   : > { %1609 = dma.hbm_to_vmem [thread:$0]  (%p2126_p3), %s2185_s0, 16, %s257_s22, %s247_s1  }
  0x73 PF: > { %p1386_p9 = scmp.ge.s32.totalorder %s1974_s24, 1  ;;  %p261_p8 = scmp.lt.s32.totalorder %s1974_s24, 7 }
  0x75   : > { %p262_p13 = pnand %p1386_p9, %p261_p8 }
  0x76   : > { %s268_s17 = sand.u32 (!%p262_p13), 1, %s1950_s18   ;;  %s274_s7 = sand.u32 (!%p262_p13), 1, %s1942_s16  }
  0x77   : > { %265 = sbr.rel (%p262_p13) target bundleno = 477 (0x1dd), region = 54  ;;  %s275_s9 = scalar_lea.sflag (!%p262_p13), [#allocation5], %s274_s7 }
  0x78   : > { %s1606_s19 = smul.u32 (!%p262_p13), 72, %s268_s17  ;;  %p2395_p3 = scmp.ne.s32.totalorder (!%p262_p13), %s2389_s10, 0 }
  0x79   : > { %s1607_s5 = smul.u32 (!%p262_p13), 576, %s274_s7 }
  0x7a   : > { %s2208_s8 = scalar_lea.vmem (!%p262_p13), [#allocation3], %s1606_s19 }
  0x7b   : > { %s2210_s15 = scalar_lea.vmem (!%p262_p13), [#allocation4], %s1607_s5 }
  0x7e   : > { %1917 = dma.done.wait (%p2395_p3), %s275_s9, 9216  }
  0x7f   : > { %1919 = vsyncadd (%p2395_p3), %s275_s9, 4294958080  ;;  %s2217_s1 = sand.u32 1, %s1930_s13   ;;  %p2396_p0 = scmp.ne.s32.totalorder %s2391_s29, 0 }
  0x80   : > { %s284_s18 = scalar_lea.sflag [#allocation7], %s2217_s1  ;;  %s286_s0 = scalar_lea.vmem [#allocation6], %s2217_s1 }
  0x81   : > { %1921 = dma.done.wait (%p2396_p0), %s284_s18, 16  }
  0x82   : > { %1923 = vsyncadd (%p2396_p0), %s284_s18, 4294967280  ;;  %s1387_s22 = sshll.u32 %s2217_s1, 3  ;;  %p1388_p1 = scmp.ne.s32.totalorder %s1958_s20, 0 }
  0x83   : > { %s2226_s11 = scalar_lea.vmem [#allocation8], %s1387_s22  ;;  %v1981_v10 = vmov (!%p1388_p1), 0.0  }
  0x84   : > { %324 = sbr.rel (%p1388_p1) target bundleno = 139 (0x8b), region = 70  ;;  %325 = vst [vmem:[#allocation2] sm:$0xff] (!%p1388_p1), %v1981_v10  ;;  %326 = vst [vmem:[#allocation2 + $0x8] sm:$0xff] (!%p1388_p1), %v1981_v10 }
  0x8b PF: > { %v1723_v11 = vld [vmem:[%s2210_s15 + $0x40] sm:$0xff]   ;;  %v1727_v15 = vld [vmem:[%s2210_s15 + $0x48] sm:$0xff]   ;;  %v1731_v19 = vld [vmem:[%s2210_s15 + $0x50] sm:$0xff]   ;;  %vm1983_vm0 = vmmov 0   ;;  %p1470_p7 = scmp.ne.s32.totalorder %s1958_s20, 1 }
  0x8c   : > { %v1724_v12 = vld [vmem:[%s2210_s15 + $0xc0] sm:$0xff]   ;;  %1486 = vmatprep.subr.bf16.mxu0 %v1723_v11  ;;  %v1728_v16 = vld [vmem:[%s2210_s15 + $0xc8] sm:$0xff]   ;;  %v1732_v20 = vld [vmem:[%s2210_s15 + $0xd0] sm:$0xff]  }
  0x8d   : > { %v1725_v13 = vld [vmem:[%s2210_s15] sm:$0xff]   ;;  %1508 = vmatprep.subr.bf16.mxu1 %v1724_v12  ;;  %v1729_v17 = vld [vmem:[%s2210_s15 + $0x8] sm:$0xff]   ;;  %v1733_v21 = vld [vmem:[%s2210_s15 + $0x10] sm:$0xff]  }
  0x8e   : > { %v1726_v14 = vld [vmem:[%s2210_s15 + $0x80] sm:$0xff]   ;;  %1487 = vmatpush3.bf16.msra.mxu0 %v1725_v13  ;;  %v1730_v18 = vld [vmem:[%s2210_s15 + $0x88] sm:$0xff]   ;;  %v1734_v22 = vld [vmem:[%s2210_s15 + $0x90] sm:$0xff]  }
  0x8f   : > { %1509 = vmatpush3.bf16.msra.mxu1 %v1726_v14  ;;  %1488 = vmatprep.subr.bf16.mxu0 %v1727_v15  ;;  %v1735_v23 = vld [vmem:[%s2210_s15 + $0x58] sm:$0xff]   ;;  %v1739_v27 = vld [vmem:[%s2210_s15 + $0x60] sm:$0xff]   ;;  %v1743_v31 = vld [vmem:[%s2210_s15 + $0x68] sm:$0xff]  }
  0x90   : > { %1510 = vmatprep.subr.bf16.mxu1 %v1728_v16  ;;  %v1736_v24 = vld [vmem:[%s2210_s15 + $0xd8] sm:$0xff]   ;;  %v1740_v28 = vld [vmem:[%s2210_s15 + $0xe0] sm:$0xff]   ;;  %v1744_v32 = vld [vmem:[%s2210_s15 + $0xe8] sm:$0xff]  }
  0x91   : > { %v1737_v25 = vld [vmem:[%s2210_s15 + $0x18] sm:$0xff]   ;;  %v1741_v29 = vld [vmem:[%s2210_s15 + $0x20] sm:$0xff]   ;;  %v1745_v33 = vld [vmem:[%s2210_s15 + $0x28] sm:$0xff]  }
  0x92   : > { %1489 = vmatpush3.bf16.msra.mxu0 %v1729_v17  ;;  %v1738_v26 = vld [vmem:[%s2210_s15 + $0x98] sm:$0xff]   ;;  %v1742_v30 = vld [vmem:[%s2210_s15 + $0xa0] sm:$0xff]   ;;  %v1746_v34 = vld [vmem:[%s2210_s15 + $0xa8] sm:$0xff]   ;;  %v1982_v17 = vmov 0.0  }
  0x93   : > { %1511 = vmatpush3.bf16.msra.mxu1 %v1730_v18  ;;  %1490 = vmatprep.subr.bf16.mxu0 %v1731_v19  ;;  %v1747_v35 = vld [vmem:[%s2210_s15 + $0x70] sm:$0xff]   ;;  %v1751_v39 = vld [vmem:[%s2210_s15 + $0x78] sm:$0xff]   ;;  %v1761_v47 = vld [vmem:[%s2210_s15 + $0x140] sm:$0xff]  }
  0x94   : > { %1512 = vmatprep.subr.bf16.mxu1 %v1732_v20  ;;  %v1748_v36 = vld [vmem:[%s2210_s15 + $0xf0] sm:$0xff]   ;;  %v1752_v40 = vld [vmem:[%s2210_s15 + $0xf8] sm:$0xff]   ;;  %v1762_v48 = vld [vmem:[%s2210_s15 + $0x100] sm:$0xff]  }
  0x95   : > { %v1749_v37 = vld [vmem:[%s2210_s15 + $0x30] sm:$0xff]   ;;  %v1753_v41 = vld [vmem:[%s2210_s15 + $0x38] sm:$0xff]   ;;  %v1763_v49 = vld [vmem:[%s2210_s15 + $0x1c0] sm:$0xff]  }
  0x96   : > { %1491 = vmatpush3.bf16.msra.mxu0 %v1733_v21  ;;  %v1750_v38 = vld [vmem:[%s2210_s15 + $0xb0] sm:$0xff]   ;;  %v1754_v42 = vld [vmem:[%s2210_s15 + $0xb8] sm:$0xff]   ;;  %v1764_v50 = vld [vmem:[%s2210_s15 + $0x180] sm:$0xff]  }
  0x97   : > { %1513 = vmatpush3.bf16.msra.mxu1 %v1734_v22  ;;  %1492 = vmatprep.subr.bf16.mxu0 %v1735_v23  ;;  %v1755_v43 = vld [vmem:[%s2208_s8] ss:$36 sps:$4 sm:$0xff]   ;;  %v1758_v45 = vld [vmem:[%s2208_s8 + $0x8] ss:$36 sps:$4 sm:$0xff]   ;;  %v1765_v51 = vld [vmem:[%s2210_s15 + $0x148] sm:$0xff]  }
  0x98   : > { %1514 = vmatprep.subr.bf16.mxu1 %v1736_v24  ;;  %v1757_v44 = vld [vmem:[%s2208_s8 + $0x4] ss:$36 sps:$4 sm:$0xff]   ;;  %v1760_v46 = vld [vmem:[%s2208_s8 + $0xc] ss:$36 sps:$4 sm:$0xff]   ;;  %v1794_v15 = vld [vmem:[%s2208_s8 + $0x14] ss:$36 sps:$4 sm:$0xff]  }
  0x99   : > { %993 = vmatprep.mubr.bf16.mxu0 %v1757_v44  ;;  %1034 = vmatprep.mubr.bf16.mxu1 %v1760_v46  ;;  %v1766_v52 = vld [vmem:[%s2210_s15 + $0x108] sm:$0xff]   ;;  %v1769_v55 = vld [vmem:[%s2210_s15 + $0x150] sm:$0xff]   ;;  %v1773_v59 = vld [vmem:[%s2210_s15 + $0x158] sm:$0xff]  }
  0x9a   : > { %1493 = vmatpush3.bf16.msra.mxu0 %v1737_v25  ;;  %v1767_v53 = vld [vmem:[%s2210_s15 + $0x1c8] sm:$0xff]   ;;  %v1770_v56 = vld [vmem:[%s2210_s15 + $0x110] sm:$0xff]   ;;  %v1774_v60 = vld [vmem:[%s2210_s15 + $0x118] sm:$0xff]  }
  0x9b   : > { %1515 = vmatpush3.bf16.msra.mxu1 %v1738_v26  ;;  %1494 = vmatprep.subr.bf16.mxu0 %v1739_v27  ;;  %v1768_v54 = vld [vmem:[%s2210_s15 + $0x188] sm:$0xff]   ;;  %v1771_v57 = vld [vmem:[%s2210_s15 + $0x1d0] sm:$0xff]   ;;  %v1775_v61 = vld [vmem:[%s2210_s15 + $0x1d8] sm:$0xff]  }
  0x9c   : > { %1516 = vmatprep.subr.bf16.mxu1 %v1740_v28  ;;  %v1772_v58 = vld [vmem:[%s2210_s15 + $0x190] sm:$0xff]   ;;  %v1776_v62 = vld [vmem:[%s2210_s15 + $0x198] sm:$0xff]   ;;  %v1777_v63 = vld [vmem:[%s2210_s15 + $0x160] sm:$0xff]  }
  0x9d   : > { %v1778_v0 = vld [vmem:[%s2210_s15 + $0x120] sm:$0xff]   ;;  %v1781_v3 = vld [vmem:[%s2210_s15 + $0x168] sm:$0xff]   ;;  %v1785_v7 = vld [vmem:[%s2210_s15 + $0x170] sm:$0xff]  }
  0x9e   : > { %1495 = vmatpush3.bf16.msra.mxu0 %v1741_v29  ;;  %v1779_v1 = vld [vmem:[%s2210_s15 + $0x1e0] sm:$0xff]   ;;  %v1782_v4 = vld [vmem:[%s2210_s15 + $0x128] sm:$0xff]   ;;  %v1786_v8 = vld [vmem:[%s2210_s15 + $0x130] sm:$0xff]  }
  0x9f   : > { %1517 = vmatpush3.bf16.msra.mxu1 %v1742_v30  ;;  %1496 = vmatprep.subr.bf16.mxu0 %v1743_v31  ;;  %v1780_v2 = vld [vmem:[%s2210_s15 + $0x1a0] sm:$0xff]   ;;  %v1783_v5 = vld [vmem:[%s2210_s15 + $0x1e8] sm:$0xff]   ;;  %v1787_v9 = vld [vmem:[%s2210_s15 + $0x1f0] sm:$0xff]  }
  0xa0   : > { %1518 = vmatprep.subr.bf16.mxu1 %v1744_v32  ;;  %v1784_v6 = vld [vmem:[%s2210_s15 + $0x1a8] sm:$0xff]   ;;  %v1788_v10 = vld [vmem:[%s2210_s15 + $0x1b0] sm:$0xff]   ;;  %v1789_v11 = vld [vmem:[%s2210_s15 + $0x178] sm:$0xff]  }
  0xa1   : > { %v1790_v12 = vld [vmem:[%s2210_s15 + $0x138] sm:$0xff]   ;;  %v1792_v14 = vld [vmem:[%s2208_s8 + $0x10] ss:$36 sps:$4 sm:$0xff]   ;;  %v1796_v18 = vld [vmem:[%s2208_s8 + $0x18] ss:$36 sps:$4 sm:$0xff]  }
  0xa2   : > { %1497 = vmatpush3.bf16.msra.mxu0 %v1745_v33  ;;  %v1791_v13 = vld [vmem:[%s2210_s15 + $0x1f8] sm:$0xff]   ;;  %v1799_v20 = vld [vmem:[%s2210_s15 + $0x200] sm:$0xff]   ;;  %v1800_v21 = vld [vmem:[%s2210_s15 + $0x208] sm:$0xff]  }
  0xa3   : > { %1519 = vmatpush3.bf16.msra.mxu1 %v1746_v34  ;;  %1498 = vmatprep.subr.bf16.mxu0 %v1747_v35  ;;  %v1795_v16 = vld [vmem:[%s2210_s15 + $0x1b8] sm:$0xff]   ;;  %v1801_v22 = vld [vmem:[%s2210_s15 + $0x210] sm:$0xff]   ;;  %v1803_v24 = vld [vmem:[%s2210_s15 + $0x220] sm:$0xff]  }
  0xa4   : > { %1520 = vmatprep.subr.bf16.mxu1 %v1748_v36  ;;  %v1798_v19 = vld [vmem:[%s2208_s8 + $0x1c] ss:$36 sps:$4 sm:$0xff]  }
  0xa5   : > { %v1802_v23 = vld [vmem:[%s2210_s15 + $0x218] sm:$0xff]   ;;  %v1804_v25 = vld [vmem:[%s2210_s15 + $0x228] sm:$0xff]   ;;  %v1805_v26 = vld [vmem:[%s2210_s15 + $0x230] sm:$0xff]  }
  0xa6   : > { %1499 = vmatpush3.bf16.msra.mxu0 %v1749_v37  ;;  %v1806_v27 = vld [vmem:[%s2210_s15 + $0x238] sm:$0xff]  }
  0xa7   : > { %1521 = vmatpush3.bf16.msra.mxu1 %v1750_v38  ;;  %1500 = vmatprep.subr.bf16.mxu0 %v1751_v39  ;;  %v1807_v28 = vld [vmem:[%s2208_s8 + $0x20] ss:$36 sps:$4 sm:$0xff]  }
  0xa8   : > { %1522 = vmatprep.subr.bf16.mxu1 %v1752_v40 }
  0xaa   : > { %1501 = vmatpush3.bf16.msra.mxu0 %v1753_v41 }
  0xab   : > { %1523 = vmatpush3.bf16.msra.mxu1 %v1754_v42  ;;  %1530 = vmatprep.subr.bf16.mxu0 %v1761_v47 }
  0xac   : > { %1552 = vmatprep.subr.bf16.mxu1 %v1763_v49 }
  0xad   : > { %994 = vmatmul.mubr.bf16.vlgmr.msra.gmra.mrb[0].mxu0 %v1755_v43 }
  0xae   : > { %1035 = vmatmul.mubr.bf16.vlgmr.msra.gmra.mrb[0].mxu1 %v1758_v45  ;;  %1531 = vmatpush3.bf16.msra.mxu0 %v1762_v48 }
  0xaf   : > { %1553 = vmatpush3.bf16.msra.mxu1 %v1764_v50  ;;  %1532 = vmatprep.subr.bf16.mxu0 %v1765_v51 }
  0xb0   : > { %1554 = vmatprep.subr.bf16.mxu1 %v1767_v53  ;;  %1075 = vmatprep.mubr.bf16.mxu0 %v1794_v15 }
  0xb1   : > { %1116 = vmatprep.mubr.bf16.mxu1 %v1798_v19 }
  0xb2   : > { %1533 = vmatpush3.bf16.msra.mxu0 %v1766_v52 }
  0xb3   : > { %1555 = vmatpush3.bf16.msra.mxu1 %v1768_v54  ;;  %1534 = vmatprep.subr.bf16.mxu0 %v1769_v55 }
  0xb4   : > { %1556 = vmatprep.subr.bf16.mxu1 %v1771_v57 }
  0xb6   : > { %1535 = vmatpush3.bf16.msra.mxu0 %v1770_v56 }
  0xb7   : > { %1557 = vmatpush3.bf16.msra.mxu1 %v1772_v58  ;;  %1536 = vmatprep.subr.bf16.mxu0 %v1773_v59  ;;  %v327_v59 = vld [vmem:[#allocation2] sm:$0xff] }
  0xb8   : > { %1558 = vmatprep.subr.bf16.mxu1 %v1775_v61 }
  0xba   : > { %1537 = vmatpush3.bf16.msra.mxu0 %v1774_v60 }
  0xbb   : > { %1559 = vmatpush3.bf16.msra.mxu1 %v1776_v62  ;;  %1538 = vmatprep.subr.bf16.mxu0 %v1777_v63  ;;  %v328_v63 = vld [vmem:[#allocation2 + $0x8] sm:$0xff] }
  0xbc   : > { %1560 = vmatprep.subr.bf16.mxu1 %v1779_v1 }
  0xbe   : > { %1539 = vmatpush3.bf16.msra.mxu0 %v1778_v0 }
  0xbf   : > { %1561 = vmatpush3.bf16.msra.mxu1 %v1780_v2  ;;  %1540 = vmatprep.subr.bf16.mxu0 %v1781_v3 }
  0xc0   : > { %1562 = vmatprep.subr.bf16.mxu1 %v1783_v5 }
  0xc2   : > { %1541 = vmatpush3.bf16.msra.mxu0 %v1782_v4 }
  0xc3   : > { %1563 = vmatpush3.bf16.msra.mxu1 %v1784_v6  ;;  %1542 = vmatprep.subr.bf16.mxu0 %v1785_v7  ;;  %v1471_v7 = vld [vmem:[%s286_s0] ss:$0 sm:$0xff] (!%p1470_p7) }
  0xc4   : > { %1564 = vmatprep.subr.bf16.mxu1 %v1787_v9 }
  0xc6   : > { %1543 = vmatpush3.bf16.msra.mxu0 %v1786_v8 }
  0xc7   : > { %1565 = vmatpush3.bf16.msra.mxu1 %v1788_v10  ;;  %1544 = vmatprep.subr.bf16.mxu0 %v1789_v11 }
  0xc8   : > { %1566 = vmatprep.subr.bf16.mxu1 %v1791_v13 }
  0xca   : > { %1545 = vmatpush3.bf16.msra.mxu0 %v1790_v12 }
  0xcb   : > { %1583 = vmatprep.subr.bf16.mxu0 %v1982_v17  ;;  %1567 = vmatpush3.bf16.msra.mxu1 %v1795_v16 }
  0xcd   : > { %1076 = vmatmul.mubr.bf16.vlgmr.msra.gmra.mrb[4].mxu0 %v1792_v14 }
  0xce   : > { %1599 = vmatprep.mubr.msk.bf16.mxu0 %vm1983_vm0, %v1982_v17  ;;  %1584 = vmatpush3.bf16.msra.mxu0 %v1799_v20 }
  0xcf   : > { %1117 = vmatmul.mubr.bf16.vlgmr.msra.gmra.mrb[4].mxu1 %v1796_v18  ;;  %1585 = vmatprep.subr.bf16.mxu0 %v1982_v17 }
  0xd2   : > { %1586 = vmatpush3.bf16.msra.mxu0 %v1800_v21 }
  0xd3   : > { %1587 = vmatprep.subr.bf16.mxu0 %v1982_v17 }
  0xd6   : > { %1588 = vmatpush3.bf16.msra.mxu0 %v1801_v22 }
  0xd7   : > { %1589 = vmatprep.subr.bf16.mxu0 %v1982_v17 }
  0xda   : > { %1590 = vmatpush3.bf16.msra.mxu0 %v1802_v23 }
  0xdb   : > { %1591 = vmatprep.subr.bf16.mxu0 %v1982_v17 }
  0xde   : > { %1592 = vmatpush3.bf16.msra.mxu0 %v1803_v24 }
  0xdf   : > { %1593 = vmatprep.subr.bf16.mxu0 %v1982_v17 }
  0xe2   : > { %1594 = vmatpush3.bf16.msra.mxu0 %v1804_v25 }
  0xe3   : > { %1595 = vmatprep.subr.bf16.mxu0 %v1982_v17 }
  0xe6   : > { %1596 = vmatpush3.bf16.msra.mxu0 %v1805_v26 }
  0xe7   : > { %1597 = vmatprep.subr.bf16.mxu0 %v1982_v17 }
  0xea   : > { %1598 = vmatpush3.bf16.msra.mxu0 %v1806_v27 }
  0xed   : > { %1600 = vmatmul.mubr.bf16.vlgmr.msra.gmra.mrb[8].mxu0 %v1807_v28 }
 0x180   : > { %v1502_v29 = vpop.f32.mrb[0].mxu0 }
 0x181   : > { %v1524_v30 = vpop.f32.mrb[0].mxu1  ;;  %v1503_v31 = vpop.f32.mrb[1].mxu0 }
 0x182   : > { %v1504_v32 = vadd.f32 %v1503_v31, %v1502_v29  ;;  %v1525_v33 = vpop.f32.mrb[1].mxu1  ;;  %v1505_v34 = vpop.f32.mrb[2].mxu0 }
 0x183   : > { %v1526_v35 = vadd.f32 %v1525_v33, %v1524_v30  ;;  %v1527_v36 = vpop.f32.mrb[2].mxu1  ;;  %v1506_v37 = vpop.f32.mrb[3].mxu0 }
 0x184   : > { %v1507_v38 = vadd.f32 %v1506_v37, %v1505_v34  ;;  %v1528_v39 = vpop.f32.mrb[3].mxu1 }
 0x185   : > { %v1037_v40 = vadd.f32 %v1526_v35, %v1504_v32  ;;  %v1529_v41 = vadd.f32 %v1528_v39, %v1527_v36 }
 0x187   : > { %v1040_v42 = vadd.f32 %v1529_v41, %v1507_v38 }
 0x1a0   : > { %v1546_v43 = vpop.f32.mrb[4].mxu0 }
 0x1a1   : > { %v1547_v44 = vpop.f32.mrb[5].mxu0 }
 0x1a2   : > { %v1548_v45 = vadd.f32 %v1547_v44, %v1546_v43  ;;  %v1549_v46 = vpop.f32.mrb[6].mxu0  ;;  %v1568_v47 = vpop.f32.mrb[4].mxu1 }
 0x1a3   : > { %v1550_v48 = vpop.f32.mrb[7].mxu0  ;;  %v1569_v51 = vpop.f32.mrb[5].mxu1 }
 0x1a4   : > { %v1078_v49 = vadd.f32 %v1548_v45, %v1037_v40  ;;  %v1551_v50 = vadd.f32 %v1550_v48, %v1549_v46  ;;  %v1570_v52 = vadd.f32 %v1569_v51, %v1568_v47  ;;  %v1571_v53 = vpop.f32.mrb[6].mxu1 }
 0x1a5   : > { %v1572_v55 = vpop.f32.mrb[7].mxu1 }
 0x1a6   : > { %v1081_v54 = vadd.f32 %v1551_v50, %v1040_v42  ;;  %v1573_v56 = vadd.f32 %v1572_v55, %v1571_v53  ;;  %v1119_v57 = vadd.f32 %v1570_v52, %v1078_v49 }
 0x1a8   : > { %v1122_v58 = vadd.f32 %v1573_v56, %v1081_v54 }
 0x1c0   : > { %v1159_v60 = vpop.f32.mrb[8].mxu0 }
 0x1c1   : > { %v1160_v61 = vadd.f32 %v1159_v60, %v1119_v57  ;;  %v1601_v62 = vpop.f32.mrb[9].mxu0  ;;  %1173 = sbr.rel (%p1470_p7) target bundleno = 468 (0x1d4), region = 74 }
 0x1c2   : > { %v1162_v0 = vpop.f32.mrb[10].mxu0 }
 0x1c3   : > { %v1166_v1 = vadd.f32 %v1160_v61, %v327_v59  ;;  %v1163_v2 = vadd.f32 %v1162_v0, %v1122_v58  ;;  %v1602_v3 = vpop.f32.mrb[11].mxu0 }
 0x1c5   : > { %1168 = vst [vmem:[#allocation2] sm:$0xff] %v1166_v1  ;;  %v1167_v4 = vadd.f32 %v1163_v2, %v328_v63 }
 0x1c7   : > { %1169 = vst [vmem:[#allocation2 + $0x8] sm:$0xff] %v1167_v4 }
 0x1cc   : > { %v1174_v5 = vld [vmem:[#allocation2] sm:$0xff] }
 0x1cd   : > { %v1183_v8 = vadd.f32 %v1471_v7, %v1174_v5 }
 0x1ce   : > { %v1175_v6 = vld [vmem:[#allocation2 + $0x8] sm:$0xff] }
 0x1cf   : > { %v1184_v9 = vadd.f32 %v1471_v7, %v1175_v6 }
 0x1d1   : > { %v1484_v10 = vpack.c.bf16 %v1184_v9, %v1183_v8 }
 0x1d3   : > { %1485 = vst [vmem:[%s2226_s11] sm:$0xff] %v1484_v10  }
 0x1d4 PF: > { %p2397_p2 = scmp.ne.s32.totalorder %s2392_s4, 0 }
 0x1d5   : > { %s1475_s10 = sshll.u32 (%p2397_p2), %s1962_s21, 2 }
 0x1d6   : > { %1201 = sbr.rel (!%p2397_p2) target bundleno = 477 (0x1dd), region = 78  ;;  %s1206_s26 = scalar_lea.vmem (%p2397_p2), %s2370_s3, %s1475_s10 }
 0x1da   : > { %v1222_v11 = vld [vmem:[%s2226_s11] sm:$0xf] (%p2397_p2)  ;;  %v1224_v12 = vld [vmem:[%s2226_s11 + $0x4] sm:$0xf] (%p2397_p2) }
 0x1db   : > { %1223 = vst [vmem:[%s1206_s26] sm:$0xf] (%p2397_p2), %v1222_v11  ;;  %1225 = vst [vmem:[%s1206_s26 + $0xc] sm:$0xf] (%p2397_p2), %v1224_v12 }
 0x1dd PF: > { %s19_s24 = sadd.s32 1, %s1974_s24   ;;  %s2399_s21 = sld [smem:[#allocation11_spill]] }
 0x1de   : > { %p2323_p5 = scmp.ge.s32.totalorder %s19_s24, 8   ;;  %s2400_s17 = sld [smem:[#allocation17_spill]] }
 0x1df   : > { %s2401_s18 = sld [smem:[#allocation12_spill]]  ;;  %s2402_s19 = sld [smem:[#allocation16_spill]] }
 0x1e0   : > { %s2403_s20 = sld [smem:[#allocation13_spill]]  ;;  %s2404_s22 = sld [smem:[#allocation14_spill]] }
 0x1e1   : > { %s2405_s4 = sld [smem:[#allocation15_spill]]  ;;  %s2406_s12 = smov %s1930_s13 }
 0x1e2   : > { %s2407_s13 = smov %s1934_s14  ;;  %s2408_s14 = smov %s2116_s28 }
 0x1e3   : > { %s2409_s15 = smov %s1942_s16  ;;  %s2410_s16 = smov %s2399_s21 }
 0x1e4   : > { %s2411_s21 = smov %s1970_s23  ;;  %18 = sbr.rel (!%p2323_p5) target bundleno = 13 (0xd), region = 174 }
 0x1e7   : > { %s2412_s23 = smov %s2405_s4 }
 0x1eb   :  { %1262 = vsyncpa [#allocation5], 1 }
 0x1ec   :  { %1264 = vsyncpa [#allocation5 + $0x1], 1 }
 0x1ed   :  { %1265 = vsyncpa [#allocation7], 1 }
 0x1ee   :  { %1267 = vsyncpa [#allocation7 + $0x1], 1 }

</bundles_post_ra>
